<compile_context>
chip_gen: v5e
topology: v5e:2x2
jax: 0.10.0
libtpu: 0.0.40
codegen_flags: <defaults>
</compile_context>

<pallas_src>
import functools
import math

import jax
import jax.numpy as jnp
from jax.experimental import pallas as pl
from jax.experimental.pallas import tpu as pltpu

NUM_SINKHORN_ITERS = 5  # default num_iter of SinkhornKnopp.forward


def gat_kernel(x_ref, w_ref, apack_ref, adj_ref, hprime_ref, alfa_ref, *, alpha):
    # h = x @ W  (MXU)
    h = jnp.dot(x_ref[...], w_ref[...], preferred_element_type=jnp.float32)   # (N, Fo)

    # Packed attention projections: one (N,Fo)@(Fo,2) matmul instead of two
    # (N,Fo)@(Fo,1) matmuls.  e[i, j] = leakyrelu(h_i . a1 + h_j . a2), which is
    # equivalent to the torch cat([h.repeat(1,N), h.repeat(N,1)]) @ a construction.
    f12 = jnp.dot(h, apack_ref[...], preferred_element_type=jnp.float32)      # (N, 2)
    f1 = f12[:, 0:1]                                                          # (N, 1)
    f2 = f12[:, 1:2]                                                          # (N, 1)
    # (N,1)->(1,N) transpose is an XLU relayout; negligible next to the (N,N) work.
    e = f1 + jnp.transpose(f2)                                                # (N, N)
    e = jnp.where(e > 0, e, alpha * e)                                        # LeakyReLU(alpha)

    # Per-row max subtraction before exp: mathematically absorbed by the first Sinkhorn
    # row normalization (row i is uniformly scaled by exp(-m_i)), but prevents exp
    # overflow for large logits.
    e = e - jnp.max(e, axis=1, keepdims=True)
    P = jnp.exp(e) * adj_ref[...]                                             # (N, N)

    # Sinkhorn-Knopp: alternate row / column scaling.  Reciprocals of the N row/col sums
    # + broadcast multiply, rather than dividing N^2 elements per half-iteration.
    # (approx=True would push the reciprocal to the EUP slot at ~1e-3 accuracy;
    #  approx=False keeps it equivalent to the torch divide path.)
    for _ in range(NUM_SINKHORN_ITERS):
        rs = jnp.sum(P, axis=1, keepdims=True)                                # (N, 1) lane-reduce
        P = P * pl.reciprocal(jnp.where(rs > 0, rs, 1.0), approx=False)
        cs = jnp.sum(P, axis=0, keepdims=True)                                # (1, N) sublane-reduce
        P = P * pl.reciprocal(jnp.where(cs > 0, cs, 1.0), approx=False)

    alfa_ref[...] = P
    hprime_ref[...] = jnp.dot(P, h, preferred_element_type=jnp.float32)


def graph_attention_layer(x, W, a, adj, alpha):
    """Forward pass. Accepts a single graph (N, Fin)/(N, N) or a batch
    (B, N, Fin)/(B, N, N); the batch axis is a 'parallel' grid axis."""
    squeeze = x.ndim == 2
    if squeeze:
        x = x[None]
        adj = adj[None]

    x = x.astype(jnp.float32)
    W = W.astype(jnp.float32)
    a = a.astype(jnp.float32)
    adj = adj.astype(jnp.float32)

    B, N, Fin = x.shape
    Fo = W.shape[1]
    # Pack a1/a2 as columns of a single (Fo, 2) matrix.
    a_pack = jnp.concatenate([a[:Fo], a[Fo:]], axis=1)                        # (Fo, 2)

    kernel = functools.partial(gat_kernel, alpha=alpha)

    h_prime, alfa = pl.pallas_call(
        kernel,
        grid=(B,),
        out_shape=(
            jax.ShapeDtypeStruct((B, N, Fo), jnp.float32),
            jax.ShapeDtypeStruct((B, N, N), jnp.float32),
        ),
        in_specs=[
            pl.BlockSpec((None, N, Fin), lambda b: (b, 0, 0)),   # x, per-graph block
            pl.BlockSpec((Fin, Fo), lambda b: (0, 0)),           # W, broadcast
            pl.BlockSpec((Fo, 2), lambda b: (0, 0)),             # packed a, broadcast
            pl.BlockSpec((None, N, N), lambda b: (b, 0, 0)),     # adj, per-graph block
        ],
        out_specs=(
            pl.BlockSpec((None, N, Fo), lambda b: (b, 0, 0)),
            pl.BlockSpec((None, N, N), lambda b: (b, 0, 0)),
        ),
        compiler_params=pltpu.CompilerParams(
            dimension_semantics=("parallel",),        # both TCs on v7x take half the batch
            vmem_limit_bytes=32 * 1024 * 1024,        # explicit budget (safe on v5e/v6e/v7x)
        ),
    )(x, W, a_pack, adj)

    if squeeze:
        return h_prime[0], alfa[0]
    return h_prime, alfa


def reference_single(x, W, a, adj, alpha):
    """Pure-JAX, torch-faithful re-implementation (single graph) for a correctness check."""
    h = x @ W
    Fo = W.shape[1]
    f1 = h @ a[:Fo]
    f2 = h @ a[Fo:]
    e = f1 + f2.T
    e = jnp.where(e > 0, e, alpha * e)
    e = jnp.exp(e)
    P = e * adj
    for _ in range(NUM_SINKHORN_ITERS):
        P = P / P.sum(1, keepdims=True)
        P = P / P.sum(0, keepdims=True)
    return P @ h, P


if __name__ == "__main__":
    B = 2
    N = 8
    in_features = 16
    out_features = 16
    alpha = 0.2

    key = jax.random.PRNGKey(0)
    kx, kw, ka, kadj = jax.random.split(key, 4)

    # Deterministic xavier_uniform_(gain=1.414)-style init for W and a.
    lim_w = 1.414 * math.sqrt(6.0 / (in_features + out_features))
    W = jax.random.uniform(kw, (in_features, out_features), jnp.float32, -lim_w, lim_w)
    lim_a = 1.414 * math.sqrt(6.0 / (2 * out_features + 1))
    a = jax.random.uniform(ka, (2 * out_features, 1), jnp.float32, -lim_a, lim_a)

    # Inputs: node features and random adjacency per graph (self-loops guarantee
    # nonzero row/col sums for Sinkhorn).
    x = jax.random.normal(kx, (B, N, in_features), jnp.float32)
    adj = (jax.random.uniform(kadj, (B, N, N)) > 0.5).astype(jnp.float32)
    adj = jnp.maximum(adj, jnp.eye(N, dtype=jnp.float32)[None])

    # Batched kernel call (parallel grid over graphs).
    h_prime, alfa = graph_attention_layer(x, W, a, adj, alpha)
    jax.block_until_ready((h_prime, alfa))

    ok = True
    for b in range(B):
        h_ref, alfa_ref = reference_single(x[b], W, a, adj[b], alpha)
        ok &= bool(jnp.allclose(h_prime[b], h_ref, rtol=1e-4, atol=1e-4))
        ok &= bool(jnp.allclose(alfa[b], alfa_ref, rtol=1e-4, atol=1e-4))
    assert ok, "batched kernel mismatch vs reference"

    # Also exercise the single-graph API (matches the original torch forward signature).
    h1, a1_out = graph_attention_layer(x[0], W, a, adj[0], alpha)
    jax.block_until_ready((h1, a1_out))
    h_ref0, alfa_ref0 = reference_single(x[0], W, a, adj[0], alpha)
    assert jnp.allclose(h1, h_ref0, rtol=1e-4, atol=1e-4), "single-graph h_prime mismatch"
    assert jnp.allclose(a1_out, alfa_ref0, rtol=1e-4, atol=1e-4), "single-graph alfa mismatch"

    print("KERNEL_OK")
</pallas_src>

<mosaic_0001>
module attributes {stable_mosaic.version = 11 : i64} {
  func.func @gat_kernel(%arg0: i32, %arg1: memref<1x8x16xf32, #tpu.memory_space<vmem>>, %arg2: memref<16x16xf32, #tpu.memory_space<vmem>>, %arg3: memref<16x2xf32, #tpu.memory_space<vmem>>, %arg4: memref<1x8x8xf32, #tpu.memory_space<vmem>>, %arg5: memref<1x8x16xf32, #tpu.memory_space<vmem>>, %arg6: memref<1x8x8xf32, #tpu.memory_space<vmem>>) attributes {dimension_semantics = [#tpu.dimension_semantics<parallel>], iteration_bounds = array<i64: 2>, scalar_prefetch = 0 : i64, scratch_operands = 0 : i64, tpu.core_type = #tpu.core_type<tc>, window_params = [{transform_indices = @transform_0, window_bounds = array<i64: 1, 8, 16>}, {pipeline_mode = #tpu.pipeline_mode<synchronous>, transform_indices = @transform_1, window_bounds = array<i64: 16, 16>}, {pipeline_mode = #tpu.pipeline_mode<synchronous>, transform_indices = @transform_2, window_bounds = array<i64: 16, 2>}, {transform_indices = @transform_3, window_bounds = array<i64: 1, 8, 8>}, {transform_indices = @transform_4, window_bounds = array<i64: 1, 8, 16>}, {transform_indices = @transform_5, window_bounds = array<i64: 1, 8, 8>}]} {
    %c0 = arith.constant 0 : index
    %c0_0 = arith.constant 0 : index
    %c0_1 = arith.constant 0 : index
    %0 = vector.load %arg1[%c0, %c0_0, %c0_1] : memref<1x8x16xf32, #tpu.memory_space<vmem>>, vector<1x8x16xf32>
    %1 = vector.shape_cast %0 : vector<1x8x16xf32> to vector<8x16xf32>
    %c0_2 = arith.constant 0 : index
    %c0_3 = arith.constant 0 : index
    %2 = vector.load %arg2[%c0_2, %c0_3] : memref<16x16xf32, #tpu.memory_space<vmem>>, vector<16x16xf32>
    %cst = arith.constant dense<0.000000e+00> : vector<8x16xf32>
    %3 = tpu.matmul %1, %2, %cst {dimension_numbers = #tpu.dot_dimension_numbers<[1], [0], [0], [1], [0, 0, 1, 1], [], []>} : vector<8x16xf32>, vector<16x16xf32>, vector<8x16xf32> -> vector<8x16xf32>
    %c0_4 = arith.constant 0 : index
    %c0_5 = arith.constant 0 : index
    %4 = vector.load %arg3[%c0_4, %c0_5] : memref<16x2xf32, #tpu.memory_space<vmem>>, vector<16x2xf32>
    %cst_6 = arith.constant dense<0.000000e+00> : vector<8x2xf32>
    %5 = tpu.matmul %3, %4, %cst_6 {dimension_numbers = #tpu.dot_dimension_numbers<[1], [0], [0], [1], [0, 0, 1, 1], [], []>} : vector<8x16xf32>, vector<16x2xf32>, vector<8x2xf32> -> vector<8x2xf32>
    %6 = vector.extract_strided_slice %5 {offsets = [0, 0], sizes = [8, 1], strides = [1, 1]} : vector<8x2xf32> to vector<8x1xf32>
    %7 = vector.extract_strided_slice %5 {offsets = [0, 1], sizes = [8, 1], strides = [1, 1]} : vector<8x2xf32> to vector<8x1xf32>
    %8 = tpu.transpose %7, [1, 0] : vector<8x1xf32> -> vector<1x8xf32>
    %9 = vector.broadcast %6 : vector<8x1xf32> to vector<8x8xf32>
    %10 = vector.broadcast %8 : vector<1x8xf32> to vector<8x8xf32>
    %11 = arith.addf %9, %10 : vector<8x8xf32>
    %cst_7 = arith.constant 0.000000e+00 : f32
    %12 = vector.broadcast %cst_7 : f32 to vector<8x8xf32>
    %13 = arith.cmpf ogt, %11, %12 : vector<8x8xf32>
    %cst_8 = arith.constant 2.000000e-01 : f32
    %14 = vector.broadcast %cst_8 : f32 to vector<8x8xf32>
    %15 = arith.mulf %14, %11 : vector<8x8xf32>
    %16 = arith.select %13, %11, %15 : vector<8x8xi1>, vector<8x8xf32>
    %cst_9 = arith.constant dense<0xFF800000> : vector<8xf32>
    %17 = vector.multi_reduction <maximumf>, %16, %cst_9 [1] : vector<8x8xf32> to vector<8xf32>
    %18 = vector.shape_cast %17 : vector<8xf32> to vector<8x1xf32>
    %19 = vector.broadcast %18 : vector<8x1xf32> to vector<8x8xf32>
    %20 = arith.subf %16, %19 : vector<8x8xf32>
    %21 = math.exp %20 : vector<8x8xf32>
    %c0_10 = arith.constant 0 : index
    %c0_11 = arith.constant 0 : index
    %c0_12 = arith.constant 0 : index
    %22 = vector.load %arg4[%c0_10, %c0_11, %c0_12] : memref<1x8x8xf32, #tpu.memory_space<vmem>>, vector<1x8x8xf32>
    %23 = vector.shape_cast %22 : vector<1x8x8xf32> to vector<8x8xf32>
    %24 = arith.mulf %21, %23 : vector<8x8xf32>
    %cst_13 = arith.constant dense<0.000000e+00> : vector<8xf32>
    %25 = vector.multi_reduction <add>, %24, %cst_13 [1] : vector<8x8xf32> to vector<8xf32>
    %26 = vector.shape_cast %25 : vector<8xf32> to vector<8x1xf32>
    %cst_14 = arith.constant 0.000000e+00 : f32
    %27 = vector.broadcast %cst_14 : f32 to vector<8x1xf32>
    %28 = arith.cmpf ogt, %26, %27 : vector<8x1xf32>
    %cst_15 = arith.constant 1.000000e+00 : f32
    %29 = vector.broadcast %cst_15 : f32 to vector<8x1xf32>
    %30 = arith.select %28, %26, %29 : vector<8x1xi1>, vector<8x1xf32>
    %31 = tpu.reciprocal %30 : vector<8x1xf32> -> vector<8x1xf32>
    %32 = vector.broadcast %31 : vector<8x1xf32> to vector<8x8xf32>
    %33 = arith.mulf %24, %32 : vector<8x8xf32>
    %cst_16 = arith.constant dense<0.000000e+00> : vector<8xf32>
    %34 = vector.multi_reduction <add>, %33, %cst_16 [0] : vector<8x8xf32> to vector<8xf32>
    %35 = vector.shape_cast %34 : vector<8xf32> to vector<1x8xf32>
    %cst_17 = arith.constant 0.000000e+00 : f32
    %36 = vector.broadcast %cst_17 : f32 to vector<1x8xf32>
    %37 = arith.cmpf ogt, %35, %36 : vector<1x8xf32>
    %cst_18 = arith.constant 1.000000e+00 : f32
    %38 = vector.broadcast %cst_18 : f32 to vector<1x8xf32>
    %39 = arith.select %37, %35, %38 : vector<1x8xi1>, vector<1x8xf32>
    %40 = tpu.reciprocal %39 : vector<1x8xf32> -> vector<1x8xf32>
    %41 = vector.broadcast %40 : vector<1x8xf32> to vector<8x8xf32>
    %42 = arith.mulf %33, %41 : vector<8x8xf32>
    %cst_19 = arith.constant dense<0.000000e+00> : vector<8xf32>
    %43 = vector.multi_reduction <add>, %42, %cst_19 [1] : vector<8x8xf32> to vector<8xf32>
    %44 = vector.shape_cast %43 : vector<8xf32> to vector<8x1xf32>
    %cst_20 = arith.constant 0.000000e+00 : f32
    %45 = vector.broadcast %cst_20 : f32 to vector<8x1xf32>
    %46 = arith.cmpf ogt, %44, %45 : vector<8x1xf32>
    %cst_21 = arith.constant 1.000000e+00 : f32
    %47 = vector.broadcast %cst_21 : f32 to vector<8x1xf32>
    %48 = arith.select %46, %44, %47 : vector<8x1xi1>, vector<8x1xf32>
    %49 = tpu.reciprocal %48 : vector<8x1xf32> -> vector<8x1xf32>
    %50 = vector.broadcast %49 : vector<8x1xf32> to vector<8x8xf32>
    %51 = arith.mulf %42, %50 : vector<8x8xf32>
    %cst_22 = arith.constant dense<0.000000e+00> : vector<8xf32>
    %52 = vector.multi_reduction <add>, %51, %cst_22 [0] : vector<8x8xf32> to vector<8xf32>
    %53 = vector.shape_cast %52 : vector<8xf32> to vector<1x8xf32>
    %cst_23 = arith.constant 0.000000e+00 : f32
    %54 = vector.broadcast %cst_23 : f32 to vector<1x8xf32>
    %55 = arith.cmpf ogt, %53, %54 : vector<1x8xf32>
    %cst_24 = arith.constant 1.000000e+00 : f32
    %56 = vector.broadcast %cst_24 : f32 to vector<1x8xf32>
    %57 = arith.select %55, %53, %56 : vector<1x8xi1>, vector<1x8xf32>
    %58 = tpu.reciprocal %57 : vector<1x8xf32> -> vector<1x8xf32>
    %59 = vector.broadcast %58 : vector<1x8xf32> to vector<8x8xf32>
    %60 = arith.mulf %51, %59 : vector<8x8xf32>
    %cst_25 = arith.constant dense<0.000000e+00> : vector<8xf32>
    %61 = vector.multi_reduction <add>, %60, %cst_25 [1] : vector<8x8xf32> to vector<8xf32>
    %62 = vector.shape_cast %61 : vector<8xf32> to vector<8x1xf32>
    %cst_26 = arith.constant 0.000000e+00 : f32
    %63 = vector.broadcast %cst_26 : f32 to vector<8x1xf32>
    %64 = arith.cmpf ogt, %62, %63 : vector<8x1xf32>
    %cst_27 = arith.constant 1.000000e+00 : f32
    %65 = vector.broadcast %cst_27 : f32 to vector<8x1xf32>
    %66 = arith.select %64, %62, %65 : vector<8x1xi1>, vector<8x1xf32>
    %67 = tpu.reciprocal %66 : vector<8x1xf32> -> vector<8x1xf32>
    %68 = vector.broadcast %67 : vector<8x1xf32> to vector<8x8xf32>
    %69 = arith.mulf %60, %68 : vector<8x8xf32>
    %cst_28 = arith.constant dense<0.000000e+00> : vector<8xf32>
    %70 = vector.multi_reduction <add>, %69, %cst_28 [0] : vector<8x8xf32> to vector<8xf32>
    %71 = vector.shape_cast %70 : vector<8xf32> to vector<1x8xf32>
    %cst_29 = arith.constant 0.000000e+00 : f32
    %72 = vector.broadcast %cst_29 : f32 to vector<1x8xf32>
    %73 = arith.cmpf ogt, %71, %72 : vector<1x8xf32>
    %cst_30 = arith.constant 1.000000e+00 : f32
    %74 = vector.broadcast %cst_30 : f32 to vector<1x8xf32>
    %75 = arith.select %73, %71, %74 : vector<1x8xi1>, vector<1x8xf32>
    %76 = tpu.reciprocal %75 : vector<1x8xf32> -> vector<1x8xf32>
    %77 = vector.broadcast %76 : vector<1x8xf32> to vector<8x8xf32>
    %78 = arith.mulf %69, %77 : vector<8x8xf32>
    %cst_31 = arith.constant dense<0.000000e+00> : vector<8xf32>
    %79 = vector.multi_reduction <add>, %78, %cst_31 [1] : vector<8x8xf32> to vector<8xf32>
    %80 = vector.shape_cast %79 : vector<8xf32> to vector<8x1xf32>
    %cst_32 = arith.constant 0.000000e+00 : f32
    %81 = vector.broadcast %cst_32 : f32 to vector<8x1xf32>
    %82 = arith.cmpf ogt, %80, %81 : vector<8x1xf32>
    %cst_33 = arith.constant 1.000000e+00 : f32
    %83 = vector.broadcast %cst_33 : f32 to vector<8x1xf32>
    %84 = arith.select %82, %80, %83 : vector<8x1xi1>, vector<8x1xf32>
    %85 = tpu.reciprocal %84 : vector<8x1xf32> -> vector<8x1xf32>
    %86 = vector.broadcast %85 : vector<8x1xf32> to vector<8x8xf32>
    %87 = arith.mulf %78, %86 : vector<8x8xf32>
    %cst_34 = arith.constant dense<0.000000e+00> : vector<8xf32>
    %88 = vector.multi_reduction <add>, %87, %cst_34 [0] : vector<8x8xf32> to vector<8xf32>
    %89 = vector.shape_cast %88 : vector<8xf32> to vector<1x8xf32>
    %cst_35 = arith.constant 0.000000e+00 : f32
    %90 = vector.broadcast %cst_35 : f32 to vector<1x8xf32>
    %91 = arith.cmpf ogt, %89, %90 : vector<1x8xf32>
    %cst_36 = arith.constant 1.000000e+00 : f32
    %92 = vector.broadcast %cst_36 : f32 to vector<1x8xf32>
    %93 = arith.select %91, %89, %92 : vector<1x8xi1>, vector<1x8xf32>
    %94 = tpu.reciprocal %93 : vector<1x8xf32> -> vector<1x8xf32>
    %95 = vector.broadcast %94 : vector<1x8xf32> to vector<8x8xf32>
    %96 = arith.mulf %87, %95 : vector<8x8xf32>
    %cst_37 = arith.constant dense<0.000000e+00> : vector<8xf32>
    %97 = vector.multi_reduction <add>, %96, %cst_37 [1] : vector<8x8xf32> to vector<8xf32>
    %98 = vector.shape_cast %97 : vector<8xf32> to vector<8x1xf32>
    %cst_38 = arith.constant 0.000000e+00 : f32
    %99 = vector.broadcast %cst_38 : f32 to vector<8x1xf32>
    %100 = arith.cmpf ogt, %98, %99 : vector<8x1xf32>
    %cst_39 = arith.constant 1.000000e+00 : f32
    %101 = vector.broadcast %cst_39 : f32 to vector<8x1xf32>
    %102 = arith.select %100, %98, %101 : vector<8x1xi1>, vector<8x1xf32>
    %103 = tpu.reciprocal %102 : vector<8x1xf32> -> vector<8x1xf32>
    %104 = vector.broadcast %103 : vector<8x1xf32> to vector<8x8xf32>
    %105 = arith.mulf %96, %104 : vector<8x8xf32>
    %cst_40 = arith.constant dense<0.000000e+00> : vector<8xf32>
    %106 = vector.multi_reduction <add>, %105, %cst_40 [0] : vector<8x8xf32> to vector<8xf32>
    %107 = vector.shape_cast %106 : vector<8xf32> to vector<1x8xf32>
    %cst_41 = arith.constant 0.000000e+00 : f32
    %108 = vector.broadcast %cst_41 : f32 to vector<1x8xf32>
    %109 = arith.cmpf ogt, %107, %108 : vector<1x8xf32>
    %cst_42 = arith.constant 1.000000e+00 : f32
    %110 = vector.broadcast %cst_42 : f32 to vector<1x8xf32>
    %111 = arith.select %109, %107, %110 : vector<1x8xi1>, vector<1x8xf32>
    %112 = tpu.reciprocal %111 : vector<1x8xf32> -> vector<1x8xf32>
    %113 = vector.broadcast %112 : vector<1x8xf32> to vector<8x8xf32>
    %114 = arith.mulf %105, %113 : vector<8x8xf32>
    %c0_43 = arith.constant 0 : index
    %c0_44 = arith.constant 0 : index
    %c0_45 = arith.constant 0 : index
    %115 = vector.load %arg6[%c0_43, %c0_44, %c0_45] : memref<1x8x8xf32, #tpu.memory_space<vmem>>, vector<1x8x8xf32>
    %116 = vector.shape_cast %115 : vector<1x8x8xf32> to vector<8x8xf32>
    %117 = vector.shape_cast %114 : vector<8x8xf32> to vector<1x8x8xf32>
    tpu.vector_store %arg6[%c0_43, %c0_44, %c0_45], %117 {strides = array<i32>} : memref<1x8x8xf32, #tpu.memory_space<vmem>>, vector<1x8x8xf32>,
    %cst_46 = arith.constant dense<0.000000e+00> : vector<8x16xf32>
    %118 = tpu.matmul %114, %3, %cst_46 {dimension_numbers = #tpu.dot_dimension_numbers<[1], [0], [0], [1], [0, 0, 1, 1], [], []>} : vector<8x8xf32>, vector<8x16xf32>, vector<8x16xf32> -> vector<8x16xf32>
    %c0_47 = arith.constant 0 : index
    %c0_48 = arith.constant 0 : index
    %c0_49 = arith.constant 0 : index
    %119 = vector.load %arg5[%c0_47, %c0_48, %c0_49] : memref<1x8x16xf32, #tpu.memory_space<vmem>>, vector<1x8x16xf32>
    %120 = vector.shape_cast %119 : vector<1x8x16xf32> to vector<8x16xf32>
    %121 = vector.shape_cast %118 : vector<8x16xf32> to vector<1x8x16xf32>
    tpu.vector_store %arg5[%c0_47, %c0_48, %c0_49], %121 {strides = array<i32>} : memref<1x8x16xf32, #tpu.memory_space<vmem>>, vector<1x8x16xf32>,
    return
  }
  func.func @transform_0(%arg0: i32) -> (i32, i32, i32) {
    %c0_i32 = arith.constant 0 : i32
    %c0_i32_0 = arith.constant 0 : i32
    %c0_i32_1 = arith.constant 0 : i32
    return %arg0, %c0_i32, %c0_i32_0 : i32, i32, i32
  }
  func.func @transform_1(%arg0: i32) -> (i32, i32) {
    %c0_i32 = arith.constant 0 : i32
    %c0_i32_0 = arith.constant 0 : i32
    %c0_i32_1 = arith.constant 0 : i32
    return %c0_i32, %c0_i32_0 : i32, i32
  }
  func.func @transform_2(%arg0: i32) -> (i32, i32) {
    %c0_i32 = arith.constant 0 : i32
    %c0_i32_0 = arith.constant 0 : i32
    %c0_i32_1 = arith.constant 0 : i32
    return %c0_i32, %c0_i32_0 : i32, i32
  }
  func.func @transform_3(%arg0: i32) -> (i32, i32, i32) {
    %c0_i32 = arith.constant 0 : i32
    %c0_i32_0 = arith.constant 0 : i32
    %c0_i32_1 = arith.constant 0 : i32
    return %arg0, %c0_i32, %c0_i32_0 : i32, i32, i32
  }
  func.func @transform_4(%arg0: i32) -> (i32, i32, i32) {
    %c0_i32 = arith.constant 0 : i32
    %c0_i32_0 = arith.constant 0 : i32
    %c0_i32_1 = arith.constant 0 : i32
    return %arg0, %c0_i32, %c0_i32_0 : i32, i32, i32
  }
  func.func @transform_5(%arg0: i32) -> (i32, i32, i32) {
    %c0_i32 = arith.constant 0 : i32
    %c0_i32_0 = arith.constant 0 : i32
    %c0_i32_1 = arith.constant 0 : i32
    return %arg0, %c0_i32, %c0_i32_0 : i32, i32, i32
  }
}

</mosaic_0001>

<bundles_post_ra>
// kernel: tpu_custom_call.1
= control target key start
LH: loop header
LB: loop body
LE: loop exit
PB: predicated region body
PF: predicated region fallthrough
CT: control target
= control target key end

     0   :  { %11 = vsyncpa [#allocation3], 0  ;;  %s1294_s0 = inlined_call_operand.vmem [shape: f32[2,8,16], index: 0, kind: input, shape index: {}]   ;;  %s1295_s1 = inlined_call_operand.hbm [shape: f32[16,16], index: 1, kind: input, shape index: {}]   ;;  %s1296_s2 = inlined_call_operand.vmem [shape: f32[16,2], index: 2, kind: input, shape index: {}]   ;;  %s1297_s3 = inlined_call_operand.hbm [shape: f32[2,8,8], index: 3, kind: input, shape index: {}]   ;;  %s1298_s4 = inlined_call_operand.hbm [shape: f32[2,8,16], index: 4, kind: output, shape index: {0}]   ;;  %s1299_s5 = inlined_call_operand.hbm [shape: f32[2,8,8], index: 5, kind: output, shape index: {1}]  }
   0x1   :  { %12 = vsyncpa [#allocation6], 0 }
   0x2   :  { %14 = vsyncpa [#allocation6 + $0x1], 0 }
   0x3   :  { %15 = vsyncpa [#allocation4], 0 }
   0x4   :  { %17 = vsyncpa [#allocation4 + $0x1], 0 }
   0x5   :  { %18 = vsyncpa [#allocation9], 0 }
   0x6   :  { %20 = vsyncpa [#allocation9 + $0x1], 0  ;;  %s1110_s18 = smov 0   ;;  %s1112_s19 = smov 0  }
   0x7   :  { %s1114_s20 = smov 0   ;;  %s1116_s21 = smov 0  }
   0x8 LB: > { %s188_s24 = sshll.u32 %s1295_s1, 4  ;;  %s1134_s25 = sadd.s32 4294967295, %s1073_s21   ;;  %s1073_s21 = sphi %s1116_s21, %s1309_s21   ;;  %s1069_s20 = sphi %s1114_s20, %s1308_s20   ;;  %s1065_s19 = sphi %s1112_s19, %s1307_s19   ;;  %s1061_s18 = sphi %s1110_s18, %s1306_s18   ;;  %s189_s24 = int_to_ptr.hbm [resolvable:$true] %s188_s24 }
   0x9   : > { %p801_p0 = scmp.ge.s32.totalorder %s1073_s21, 1  ;;  %p115_p1 = scmp.eq.s32.totalorder %s1134_s25, 0 }
   0xa   : > { %p177_p2 = scmp.lt.s32.totalorder %s1073_s21, 3  ;;  %s1075_s27 = smov [#allocation2]  }
   0xb   : > { %s190_s28 = sshll.u32 %s1075_s27, 4  ;;  %s1076_s29 = smov 128   ;;  %s191_s28 = int_to_ptr.vmem [resolvable:$true] %s190_s28 }
   0xc   : > { %p1139_p3 = pnand %p801_p0, %p177_p2  ;;  %s1077_s30 = smov 8  }
   0xd   : > { %s800_s6 = sadd.s32 4294967294, %s1073_s21   ;;  %s1150_s7 = sadd.s32 1, %s1073_s21  }
   0xe   : > { %p831_p4 = pneg %p1139_p3  ;;  %s101_s8 = sadd.s32 1, %s1069_s20 }
   0xf   : > { %s98_s9 = ssub.s32 %s1073_s21, %s1150_s7  ;;  %p108_p7 = scmp.ne.s32.totalorder %s1069_s20, %s1065_s19 }
  0x10   : > { %p832_p6 = pnand %p831_p4, %p115_p1  ;;  %p99_p8 = scmp.eq.s32.totalorder %s98_s9, 0 }
  0x11   : > { %p109_p9 = scmp.eq.s32.totalorder %s1073_s21, 0  ;;  %p114_p10 = scmp.ne.s32.totalorder %s1065_s19, %s1061_s18 }
  0x12   : > { %834 = dma.hbm_to_vmem [thread:$0]  (!%p832_p6), %s189_s24, 256, %s191_s28, [#allocation3], %s1076_s29, %s1076_s29, %s1077_s30  }
  0x13   : > { %p138_p11 = scmp.eq.s32.totalorder %s1134_s25, 1  ;;  %p1166_p12 = por %p115_p1, %p114_p10 }
  0x14   : > { %s1162_s10 = scalar_select %p99_p8, %s1069_s20, %s101_s8  }
  0x15   : > { %p1170_p13 = por %p138_p11, %p108_p7  ;;  %p144_p0 = scmp.eq.s32.totalorder %s800_s6, 1 }
  0x16   : > { %p110_p2 = por %p109_p9, %p108_p7  ;;  %s214_s13 = sand.u32 1, %s1069_s20  }
  0x17   : > { %p1175_p4 = por %p144_p0, %p114_p10  ;;  %p847_p6 = scmp.lt.s32.totalorder %s1073_s21, 2 }
  0x18   : > { %s804_s15 = sshll.u32 %s214_s13, 3  ;;  %s805_s16 = sshll.u32 %s1073_s21, 3 }
  0x19   : > { %s222_s23 = scalar_lea.hbm %s1297_s3, %s805_s16  ;;  %s218_s27 = scalar_lea.vmem [#allocation5], %s804_s15 }
  0x1a   : > { %s224_s24 = sshll.u32 %s222_s23, 4  ;;  %s226_s28 = sshll.u32 %s218_s27, 4  ;;  %s225_s24 = int_to_ptr.hbm [resolvable:$true] %s224_s24  ;;  %s227_s28 = int_to_ptr.vmem [resolvable:$true] %s226_s28 }
  0x1b   : > { %p1184_p8 = pnand %p847_p6, %p110_p2  ;;  %s215_s30 = scalar_lea.sflag [#allocation6], %s214_s13 }
  0x1c   : > { %s941_s6 = sshra.s32 %s225_s24, 4  ;;  %s948_s15 = scalar_lea.hbm %s1297_s3, 16  ;;  %s942_s6 = int_to_ptr.hbm [resolvable:$true] %s941_s6 }
  0x1d   : > { %s943_s8 = scalar_lea.hbm %s942_s6, 8  ;;  %p945_p9 = pneg %p1184_p8 }
  0x1e   : > { %p944_p7 = scmp.ne.s32.totalorder %s942_s6, %s943_s8  ;;  %p949_p0 = scmp.lt.s32.totalorder %s942_s6, %s1297_s3 }
  0x1f   : > { %p950_p2 = scmp.lt.s32.totalorder %s948_s15, %s943_s8 }
  0x20   : > { %p946_p10 = pnand %p945_p9, %p944_p7 }
  0x21   : > { %p951_p6 = por %p950_p2, %p949_p0 }
  0x22   : > { %p947_p11 = pneg %p946_p10 }
  0x24   : > { %p952_p5 = pnand %p951_p6, %p947_p11 }
  0x26   : > { %955 = shalt.err (!%p952_p5)
}
  0x27   : > { %838 = dma.hbm_to_vmem [thread:$0]  (!%p1184_p8), %s225_s24, 128, %s227_s28, %s215_s30  }
  0x28   : > { %235 = sbr.rel (%p1139_p3) target bundleno = 1721 (0x6b9), region = 36 }
  0x2d   : > { %1044 = dma.done.wait (%p115_p1), [#allocation3], 256  }
  0x2e   : > { %1046 = vsyncadd (%p115_p1), [#allocation3], 4294967040  ;;  %s1205_s13 = sand.u32 1, %s1065_s19  }
  0x2f   : > { %s1208_s23 = sshll.u32 %s1205_s13, 3  ;;  %s243_s27 = scalar_lea.sflag [#allocation6], %s1205_s13 }
  0x30   : > { %s246_s24 = scalar_lea.vmem [#allocation5], %s1208_s23 }
  0x31   : > { %1048 = dma.done.wait (%p1166_p12), %s243_s27, 128  }
  0x32   : > { %1050 = vsyncadd (%p1166_p12), %s243_s27, 4294967168  ;;  %p283_p3 = scmp.lt.s32.totalorder %s1134_s25, 1  ;;  %v289_v0 = vld [vmem:[#allocation2 + $0x8] sm:$0xff]  ;;  %v288_v1 = vld [vmem:[#allocation2] sm:$0xff]  ;;  %vm290_vm0 = vcmask 130048   ;;  %v1078_v6 = vmov 0  }
  0x33   : > { %308 = vmatpush.msra.mxu0 %v289_v0  ;;  %v315_v3 = vld [vmem:[%s1296_s2 + $0x8] sm:$0xff]  ;;  %v314_v4 = vld [vmem:[%s1296_s2] sm:$0xff]  ;;  %888 = vset.pattern.permute.xlu0 %v1078_v6  ;;  %s1079_s15 = smov 127   ;;  %vm384_vm2 = vcmask 64512   ;;  %v391_v19 = vld [vmem:[%s246_s24] sm:$0xff]  ;;  %s282_s17 = scalar_lea.vmem [#allocation8], %s1208_s23 }
  0x34   : > { %s284_s26 = scalar_select %p283_p3, %s1134_s25, 1  ;;  %333 = vmatpush.msra.mxu1 %v315_v3 }
  0x35   : > { %309 = vmatpush.msra.mxu0 %v288_v1  ;;  %s817_s22 = sshll.u32 %s1134_s25, 3  ;;  %s644_s30 = scalar_lea.sflag [#allocation9], %s1205_s13 }
  0x36   : > { %s811_s28 = sshll.u32 %s284_s26, 3  ;;  %334 = vmatpush.msra.mxu1 %v314_v4  ;;  %s668_s26 = scalar_lea.hbm %s1299_s5, %s817_s22 }
  0x37   : > { %s286_s6 = scalar_lea.vmem %s1294_s0, %s811_s28  ;;  %s670_s28 = sshll.u32 %s282_s17, 4  ;;  %s671_s28 = int_to_ptr.vmem [resolvable:$true] %s670_s28 }
  0x38   : > { %v287_v2 = vld [vmem:[%s286_s6] sm:$0xff]  ;;  %s672_s29 = sshll.u32 %s668_s26, 4  ;;  %s991_s25 = scalar_lea.hbm %s1299_s5, 16  ;;  %s673_s29 = int_to_ptr.hbm [resolvable:$true] %s672_s29 }
  0x39   : > { %812 = vmatmul.msk.f32.vlgmr.msra.gmra.mxu0 %vm290_vm0, %v287_v2  ;;  %s985_s6 = sshra.s32 %s673_s29, 4  ;;  %s986_s6 = int_to_ptr.hbm [resolvable:$true] %s985_s6 }
  0x3a   : > { %s987_s8 = scalar_lea.hbm %s986_s6, 8  ;;  %p992_p8 = scmp.lt.s32.totalorder %s986_s6, %s1299_s5 }
  0x3b   : > { %p988_p1 = scmp.ne.s32.totalorder %s986_s6, %s987_s8  ;;  %p993_p7 = scmp.lt.s32.totalorder %s991_s25, %s987_s8 }
  0x3d   : > { %p989_p5 = pnand %p988_p1, %p1170_p13  ;;  %p994_p9 = por %p993_p7, %p992_p8 }
  0x3f   : > { %p990_p12 = pneg %p989_p5 }
  0x41   : > { %p995_p10 = pnand %p994_p9, %p990_p12 }
  0xb6   : > { %v311_v5 = vpop.f32.mrf.mxu0 }
  0xb7   : > { %813 = vmatmul.msk.f32.vlgmr.msra.gmra.mxu1 %vm290_vm0, %v311_v5  ;;  %632 = vmatpush.msra.mxu2 %v311_v5 }
 0x134   : > { %v336_v7 = vpop.f32.mrf.mxu1 }
 0x135   : > { %340 = vrot.lane.b32.xlu0 %v336_v7, %s1079_s15 }
 0x13d   : > { %376 = vperm.xlu0 %888, %v336_v7  }
 0x1a7   : > { %v341_v8 = vpop.permute.xlu0 %340 }
 0x1a8   : > { %343 = vxpose.xlu1.b32.start.end [1/1] (short) (narrow) %v341_v8, 8 }
 0x1af   : > { %v377_v11 = vpop.permute.xlu0 %376 }
 0x24c   : > { %v359_v9 = vpop.trf.xlu1 }
 0x24d   : > { %v379_v10 = vperm.slane %v359_v9, 0 }
 0x24f   : > { %v380_v12 = vadd.f32 %v379_v10, %v377_v11 }
 0x251   : > { %vm381_vm1 = vcmp.gt.f32.partialorder %v380_v12, 0.0  ;;  %v382_v13 = vmul.f32 0.2, %v380_v12 }
 0x253   : > { %v383_v14 = vsel %vm381_vm1, %v380_v12, %v382_v13 }
 0x254   : > { %v385_v15 = vsel %vm384_vm2, %v383_v14, -inf }
 0x255   : > { %386 = vmax.xlane.f32.xlu1 %v385_v15 }
 0x2c8   : > { %v387_v16 = vpop.xlane.xlu1 %386 }
 0x2c9   : > { %v388_v17 = vsub.f32 %v383_v14, %v387_v16 }
 0x2cb   : > { %v389_v18 = vmul.f32 1.442695, %v388_v17 }
 0x2cd   : > { %889 = vpow2.f32 %v389_v18 }
 0x2d3   : > { %v890_v20 = vpop.eup %889 }
 0x2d4   : > { %v392_v21 = vmul.f32 %v890_v20, %v391_v19 }
 0x2d6   : > { %v393_v22 = vsel %vm384_vm2, %v392_v21, 0.0 }
 0x2d7   : > { %394 = vadd.xlane.f32.xlu2 %v393_v22 }
 0x34a   : > { %v395_v23 = vpop.xlane.xlu2 %394 }
 0x34b   : > { %vm396_vm3 = vcmp.gt.f32.partialorder %v395_v23, 0.0 }
 0x34c   : > { %v397_v24 = vsel %vm396_vm3, %v395_v23, 1.0 }
 0x34d   : > { %891 = vrcp.f32 %v397_v24  ;;  %v409_v28 = vand.u32 2147483648, %v397_v24  ;;  %v407_v30 = vand.u32 2147483647, %v397_v24  ;;  %vm403_vm5 = vweird.f32 %v397_v24 }
 0x34f   : > { %v410_v32 = vor.u32 1.1754944e-38, %v409_v28  ;;  %vm408_vm7 = vcmp.eq.f32.partialorder %v407_v30, 8.507059e+37 }
 0x353   : > { %v892_v25 = vpop.eup %891 }
 0x354   : > { %v399_v26 = vmul.f32 %v892_v25, %v397_v24  ;;  %vm404_vm4 = vweird.f32 %v892_v25 }
 0x355   : > { %vm405_vm6 = vmor %vm403_vm5, %vm404_vm4 }
 0x356   : > { %v400_v27 = vsub.f32 1.0, %v399_v26 }
 0x358   : > { %v401_v29 = vmul.f32 %v892_v25, %v400_v27 }
 0x35a   : > { %v402_v31 = vadd.f32 %v892_v25, %v401_v29 }
 0x35c   : > { %v406_v33 = vsel %vm405_vm6, %v892_v25, %v402_v31 }
 0x35d   : > { %v411_v34 = vsel %vm408_vm7, %v410_v32, %v406_v33 }
 0x35e   : > { %v412_v35 = vmul.f32 %v411_v34, %v392_v21 }
 0x360   : > { %v413_v36 = vsel %vm384_vm2, %v412_v35, 0.0 }
 0x361   : > { %v414_v37 = vrot.slane %v413_v36, 4 }
 0x363   : > { %v415_v38 = vadd.f32 %v414_v37, %v413_v36 }
 0x365   : > { %v416_v39 = vrot.slane %v415_v38, 2 }
 0x367   : > { %v417_v40 = vadd.f32 %v416_v39, %v415_v38 }
 0x369   : > { %v418_v41 = vrot.slane %v417_v40, 1 }
 0x36b   : > { %v419_v42 = vadd.f32 %v418_v41, %v417_v40 }
 0x36d   : > { %vm420_vm8 = vcmp.gt.f32.partialorder %v419_v42, 0.0 }
 0x36e   : > { %v421_v43 = vsel %vm420_vm8, %v419_v42, 1.0 }
 0x36f   : > { %893 = vrcp.f32 %v421_v43  ;;  %v433_v47 = vand.u32 2147483648, %v421_v43  ;;  %v431_v49 = vand.u32 2147483647, %v421_v43  ;;  %vm427_vm10 = vweird.f32 %v421_v43 }
 0x371   : > { %v434_v51 = vor.u32 1.1754944e-38, %v433_v47  ;;  %vm432_vm12 = vcmp.eq.f32.partialorder %v431_v49, 8.507059e+37 }
 0x375   : > { %v894_v44 = vpop.eup %893 }
 0x376   : > { %v423_v45 = vmul.f32 %v894_v44, %v421_v43  ;;  %vm428_vm9 = vweird.f32 %v894_v44 }
 0x377   : > { %vm429_vm11 = vmor %vm427_vm10, %vm428_vm9 }
 0x378   : > { %v424_v46 = vsub.f32 1.0, %v423_v45 }
 0x37a   : > { %v425_v48 = vmul.f32 %v894_v44, %v424_v46 }
 0x37c   : > { %v426_v50 = vadd.f32 %v894_v44, %v425_v48 }
 0x37e   : > { %v430_v52 = vsel %vm429_vm11, %v894_v44, %v426_v50 }
 0x37f   : > { %v435_v53 = vsel %vm432_vm12, %v434_v51, %v430_v52 }
 0x380   : > { %v436_v54 = vmul.f32 %v435_v53, %v412_v35 }
 0x382   : > { %v437_v55 = vsel %vm384_vm2, %v436_v54, 0.0 }
 0x383   : > { %438 = vadd.xlane.f32.xlu2 %v437_v55 }
 0x3f6   : > { %v439_v56 = vpop.xlane.xlu2 %438 }
 0x3f7   : > { %vm440_vm13 = vcmp.gt.f32.partialorder %v439_v56, 0.0 }
 0x3f8   : > { %v441_v57 = vsel %vm440_vm13, %v439_v56, 1.0 }
 0x3f9   : > { %895 = vrcp.f32 %v441_v57  ;;  %v453_v61 = vand.u32 2147483648, %v441_v57  ;;  %v451_v63 = vand.u32 2147483647, %v441_v57  ;;  %vm447_vm15 = vweird.f32 %v441_v57 }
 0x3fb   : > { %v454_v1 = vor.u32 1.1754944e-38, %v453_v61  ;;  %vm452_vm3 = vcmp.eq.f32.partialorder %v451_v63, 8.507059e+37 }
 0x3ff   : > { %v896_v58 = vpop.eup %895 }
 0x400   : > { %v443_v59 = vmul.f32 %v896_v58, %v441_v57  ;;  %vm448_vm14 = vweird.f32 %v896_v58 }
 0x401   : > { %vm449_vm1 = vmor %vm447_vm15, %vm448_vm14 }
 0x402   : > { %v444_v60 = vsub.f32 1.0, %v443_v59 }
 0x404   : > { %v445_v62 = vmul.f32 %v896_v58, %v444_v60 }
 0x406   : > { %v446_v0 = vadd.f32 %v896_v58, %v445_v62 }
 0x408   : > { %v450_v2 = vsel %vm449_vm1, %v896_v58, %v446_v0 }
 0x409   : > { %v455_v3 = vsel %vm452_vm3, %v454_v1, %v450_v2 }
 0x40a   : > { %v456_v4 = vmul.f32 %v455_v3, %v436_v54 }
 0x40c   : > { %v457_v5 = vsel %vm384_vm2, %v456_v4, 0.0 }
 0x40d   : > { %v458_v6 = vrot.slane %v457_v5, 4 }
 0x40f   : > { %v459_v7 = vadd.f32 %v458_v6, %v457_v5 }
 0x411   : > { %v460_v8 = vrot.slane %v459_v7, 2 }
 0x413   : > { %v461_v9 = vadd.f32 %v460_v8, %v459_v7 }
 0x415   : > { %v462_v10 = vrot.slane %v461_v9, 1 }
 0x417   : > { %v463_v11 = vadd.f32 %v462_v10, %v461_v9 }
 0x419   : > { %vm464_vm4 = vcmp.gt.f32.partialorder %v463_v11, 0.0 }
 0x41a   : > { %v465_v12 = vsel %vm464_vm4, %v463_v11, 1.0 }
 0x41b   : > { %897 = vrcp.f32 %v465_v12  ;;  %v477_v16 = vand.u32 2147483648, %v465_v12  ;;  %v475_v18 = vand.u32 2147483647, %v465_v12  ;;  %vm471_vm6 = vweird.f32 %v465_v12 }
 0x41d   : > { %v478_v20 = vor.u32 1.1754944e-38, %v477_v16  ;;  %vm476_vm8 = vcmp.eq.f32.partialorder %v475_v18, 8.507059e+37 }
 0x421   : > { %v898_v13 = vpop.eup %897 }
 0x422   : > { %v467_v14 = vmul.f32 %v898_v13, %v465_v12  ;;  %vm472_vm5 = vweird.f32 %v898_v13 }
 0x423   : > { %vm473_vm7 = vmor %vm471_vm6, %vm472_vm5 }
 0x424   : > { %v468_v15 = vsub.f32 1.0, %v467_v14 }
 0x426   : > { %v469_v17 = vmul.f32 %v898_v13, %v468_v15 }
 0x428   : > { %v470_v19 = vadd.f32 %v898_v13, %v469_v17 }
 0x42a   : > { %v474_v21 = vsel %vm473_vm7, %v898_v13, %v470_v19 }
 0x42b   : > { %v479_v22 = vsel %vm476_vm8, %v478_v20, %v474_v21 }
 0x42c   : > { %v480_v23 = vmul.f32 %v479_v22, %v456_v4 }
 0x42e   : > { %v481_v24 = vsel %vm384_vm2, %v480_v23, 0.0 }
 0x42f   : > { %482 = vadd.xlane.f32.xlu2 %v481_v24 }
 0x4a2   : > { %v483_v25 = vpop.xlane.xlu2 %482 }
 0x4a3   : > { %vm484_vm9 = vcmp.gt.f32.partialorder %v483_v25, 0.0 }
 0x4a4   : > { %v485_v26 = vsel %vm484_vm9, %v483_v25, 1.0 }
 0x4a5   : > { %899 = vrcp.f32 %v485_v26  ;;  %v497_v30 = vand.u32 2147483648, %v485_v26  ;;  %v495_v32 = vand.u32 2147483647, %v485_v26  ;;  %vm491_vm11 = vweird.f32 %v485_v26 }
 0x4a7   : > { %v498_v34 = vor.u32 1.1754944e-38, %v497_v30  ;;  %vm496_vm13 = vcmp.eq.f32.partialorder %v495_v32, 8.507059e+37 }
 0x4ab   : > { %v900_v27 = vpop.eup %899 }
 0x4ac   : > { %v487_v28 = vmul.f32 %v900_v27, %v485_v26  ;;  %vm492_vm10 = vweird.f32 %v900_v27 }
 0x4ad   : > { %vm493_vm12 = vmor %vm491_vm11, %vm492_vm10 }
 0x4ae   : > { %v488_v29 = vsub.f32 1.0, %v487_v28 }
 0x4b0   : > { %v489_v31 = vmul.f32 %v900_v27, %v488_v29 }
 0x4b2   : > { %v490_v33 = vadd.f32 %v900_v27, %v489_v31 }
 0x4b4   : > { %v494_v35 = vsel %vm493_vm12, %v900_v27, %v490_v33 }
 0x4b5   : > { %v499_v36 = vsel %vm496_vm13, %v498_v34, %v494_v35 }
 0x4b6   : > { %v500_v37 = vmul.f32 %v499_v36, %v480_v23 }
 0x4b8   : > { %v501_v38 = vsel %vm384_vm2, %v500_v37, 0.0 }
 0x4b9   : > { %v502_v39 = vrot.slane %v501_v38, 4 }
 0x4bb   : > { %v503_v40 = vadd.f32 %v502_v39, %v501_v38 }
 0x4bd   : > { %v504_v41 = vrot.slane %v503_v40, 2 }
 0x4bf   : > { %v505_v42 = vadd.f32 %v504_v41, %v503_v40 }
 0x4c1   : > { %v506_v43 = vrot.slane %v505_v42, 1 }
 0x4c3   : > { %v507_v44 = vadd.f32 %v506_v43, %v505_v42 }
 0x4c5   : > { %vm508_vm14 = vcmp.gt.f32.partialorder %v507_v44, 0.0 }
 0x4c6   : > { %v509_v45 = vsel %vm508_vm14, %v507_v44, 1.0 }
 0x4c7   : > { %901 = vrcp.f32 %v509_v45  ;;  %v521_v49 = vand.u32 2147483648, %v509_v45  ;;  %v519_v51 = vand.u32 2147483647, %v509_v45  ;;  %vm515_vm1 = vweird.f32 %v509_v45 }
 0x4c9   : > { %v522_v53 = vor.u32 1.1754944e-38, %v521_v49  ;;  %vm520_vm4 = vcmp.eq.f32.partialorder %v519_v51, 8.507059e+37 }
 0x4cd   : > { %v902_v46 = vpop.eup %901 }
 0x4ce   : > { %v511_v47 = vmul.f32 %v902_v46, %v509_v45  ;;  %vm516_vm15 = vweird.f32 %v902_v46 }
 0x4cf   : > { %vm517_vm3 = vmor %vm515_vm1, %vm516_vm15 }
 0x4d0   : > { %v512_v48 = vsub.f32 1.0, %v511_v47 }
 0x4d2   : > { %v513_v50 = vmul.f32 %v902_v46, %v512_v48 }
 0x4d4   : > { %v514_v52 = vadd.f32 %v902_v46, %v513_v50 }
 0x4d6   : > { %v518_v54 = vsel %vm517_vm3, %v902_v46, %v514_v52 }
 0x4d7   : > { %v523_v55 = vsel %vm520_vm4, %v522_v53, %v518_v54 }
 0x4d8   : > { %v524_v56 = vmul.f32 %v523_v55, %v500_v37 }
 0x4da   : > { %v525_v57 = vsel %vm384_vm2, %v524_v56, 0.0 }
 0x4db   : > { %526 = vadd.xlane.f32.xlu0 %v525_v57 }
 0x54e   : > { %v527_v58 = vpop.xlane.xlu0 %526 }
 0x54f   : > { %vm528_vm5 = vcmp.gt.f32.partialorder %v527_v58, 0.0 }
 0x550   : > { %v529_v59 = vsel %vm528_vm5, %v527_v58, 1.0 }
 0x551   : > { %903 = vrcp.f32 %v529_v59  ;;  %v541_v63 = vand.u32 2147483648, %v529_v59  ;;  %v539_v1 = vand.u32 2147483647, %v529_v59  ;;  %vm535_vm7 = vweird.f32 %v529_v59 }
 0x553   : > { %v542_v3 = vor.u32 1.1754944e-38, %v541_v63  ;;  %vm540_vm9 = vcmp.eq.f32.partialorder %v539_v1, 8.507059e+37 }
 0x557   : > { %v904_v60 = vpop.eup %903 }
 0x558   : > { %v531_v61 = vmul.f32 %v904_v60, %v529_v59  ;;  %vm536_vm6 = vweird.f32 %v904_v60 }
 0x559   : > { %vm537_vm8 = vmor %vm535_vm7, %vm536_vm6 }
 0x55a   : > { %v532_v62 = vsub.f32 1.0, %v531_v61 }
 0x55c   : > { %v533_v0 = vmul.f32 %v904_v60, %v532_v62 }
 0x55e   : > { %v534_v2 = vadd.f32 %v904_v60, %v533_v0 }
 0x560   : > { %v538_v4 = vsel %vm537_vm8, %v904_v60, %v534_v2 }
 0x561   : > { %v543_v5 = vsel %vm540_vm9, %v542_v3, %v538_v4 }
 0x562   : > { %v544_v6 = vmul.f32 %v543_v5, %v524_v56 }
 0x564   : > { %v545_v7 = vsel %vm384_vm2, %v544_v6, 0.0 }
 0x565   : > { %v546_v8 = vrot.slane %v545_v7, 4 }
 0x567   : > { %v547_v9 = vadd.f32 %v546_v8, %v545_v7 }
 0x569   : > { %v548_v10 = vrot.slane %v547_v9, 2 }
 0x56b   : > { %v549_v11 = vadd.f32 %v548_v10, %v547_v9 }
 0x56d   : > { %v550_v12 = vrot.slane %v549_v11, 1 }
 0x56f   : > { %v551_v13 = vadd.f32 %v550_v12, %v549_v11 }
 0x571   : > { %vm552_vm10 = vcmp.gt.f32.partialorder %v551_v13, 0.0 }
 0x572   : > { %v553_v14 = vsel %vm552_vm10, %v551_v13, 1.0 }
 0x573   : > { %905 = vrcp.f32 %v553_v14  ;;  %v565_v18 = vand.u32 2147483648, %v553_v14  ;;  %v563_v20 = vand.u32 2147483647, %v553_v14  ;;  %vm559_vm12 = vweird.f32 %v553_v14 }
 0x575   : > { %v566_v22 = vor.u32 1.1754944e-38, %v565_v18  ;;  %vm564_vm14 = vcmp.eq.f32.partialorder %v563_v20, 8.507059e+37 }
 0x579   : > { %v906_v15 = vpop.eup %905 }
 0x57a   : > { %v555_v16 = vmul.f32 %v906_v15, %v553_v14  ;;  %vm560_vm11 = vweird.f32 %v906_v15 }
 0x57b   : > { %vm561_vm13 = vmor %vm559_vm12, %vm560_vm11 }
 0x57c   : > { %v556_v17 = vsub.f32 1.0, %v555_v16 }
 0x57e   : > { %v557_v19 = vmul.f32 %v906_v15, %v556_v17 }
 0x580   : > { %v558_v21 = vadd.f32 %v906_v15, %v557_v19 }
 0x582   : > { %v562_v23 = vsel %vm561_vm13, %v906_v15, %v558_v21 }
 0x583   : > { %v567_v24 = vsel %vm564_vm14, %v566_v22, %v562_v23 }
 0x584   : > { %v568_v25 = vmul.f32 %v567_v24, %v544_v6 }
 0x586   : > { %v569_v26 = vsel %vm384_vm2, %v568_v25, 0.0 }
 0x587   : > { %570 = vadd.xlane.f32.xlu2 %v569_v26 }
 0x5fa   : > { %v571_v27 = vpop.xlane.xlu2 %570 }
 0x5fb   : > { %vm572_vm15 = vcmp.gt.f32.partialorder %v571_v27, 0.0 }
 0x5fc   : > { %v573_v28 = vsel %vm572_vm15, %v571_v27, 1.0 }
 0x5fd   : > { %907 = vrcp.f32 %v573_v28  ;;  %v585_v32 = vand.u32 2147483648, %v573_v28  ;;  %v583_v34 = vand.u32 2147483647, %v573_v28  ;;  %vm579_vm3 = vweird.f32 %v573_v28 }
 0x5ff   : > { %v586_v36 = vor.u32 1.1754944e-38, %v585_v32  ;;  %vm584_vm5 = vcmp.eq.f32.partialorder %v583_v34, 8.507059e+37 }
 0x603   : > { %v908_v29 = vpop.eup %907 }
 0x604   : > { %v575_v30 = vmul.f32 %v908_v29, %v573_v28  ;;  %vm580_vm1 = vweird.f32 %v908_v29 }
 0x605   : > { %vm581_vm4 = vmor %vm579_vm3, %vm580_vm1 }
 0x606   : > { %v576_v31 = vsub.f32 1.0, %v575_v30 }
 0x608   : > { %v577_v33 = vmul.f32 %v908_v29, %v576_v31 }
 0x60a   : > { %v578_v35 = vadd.f32 %v908_v29, %v577_v33 }
 0x60c   : > { %v582_v37 = vsel %vm581_vm4, %v908_v29, %v578_v35 }
 0x60d   : > { %v587_v38 = vsel %vm584_vm5, %v586_v36, %v582_v37 }
 0x60e   : > { %v588_v39 = vmul.f32 %v587_v38, %v568_v25 }
 0x610   : > { %v589_v40 = vsel %vm384_vm2, %v588_v39, 0.0 }
 0x611   : > { %v590_v41 = vrot.slane %v589_v40, 4 }
 0x613   : > { %v591_v42 = vadd.f32 %v590_v41, %v589_v40 }
 0x615   : > { %v592_v43 = vrot.slane %v591_v42, 2 }
 0x617   : > { %v593_v44 = vadd.f32 %v592_v43, %v591_v42 }
 0x619   : > { %v594_v45 = vrot.slane %v593_v44, 1 }
 0x61b   : > { %v595_v46 = vadd.f32 %v594_v45, %v593_v44 }
 0x61d   : > { %vm596_vm6 = vcmp.gt.f32.partialorder %v595_v46, 0.0 }
 0x61e   : > { %v597_v47 = vsel %vm596_vm6, %v595_v46, 1.0 }
 0x61f   : > { %909 = vrcp.f32 %v597_v47  ;;  %v609_v51 = vand.u32 2147483648, %v597_v47  ;;  %v607_v53 = vand.u32 2147483647, %v597_v47  ;;  %vm603_vm8 = vweird.f32 %v597_v47 }
 0x621   : > { %v610_v55 = vor.u32 1.1754944e-38, %v609_v51  ;;  %vm608_vm10 = vcmp.eq.f32.partialorder %v607_v53, 8.507059e+37 }
 0x625   : > { %v910_v48 = vpop.eup %909 }
 0x626   : > { %v599_v49 = vmul.f32 %v910_v48, %v597_v47  ;;  %vm604_vm7 = vweird.f32 %v910_v48 }
 0x627   : > { %vm605_vm9 = vmor %vm603_vm8, %vm604_vm7 }
 0x628   : > { %v600_v50 = vsub.f32 1.0, %v599_v49 }
 0x62a   : > { %v601_v52 = vmul.f32 %v910_v48, %v600_v50 }
 0x62c   : > { %v602_v54 = vadd.f32 %v910_v48, %v601_v52 }
 0x62e   : > { %v606_v56 = vsel %vm605_vm9, %v910_v48, %v602_v54 }
 0x62f   : > { %v611_v57 = vsel %vm608_vm10, %v610_v55, %v606_v56 }
 0x630   : > { %v612_v58 = vmul.f32 %v611_v57, %v588_v39 }
 0x632   : > { %814 = vmatmul.msk.f32.vlgmr.msra.gmra.mxu2 %vm384_vm2, %v612_v58  ;;  %613 = vst.msk [vmem:[%s282_s17] sm:$0xff] %vm384_vm2, %v612_v58 }
 0x633   : > { %998 = shalt.err (!%p995_p10)
}
 0x634   : > { %828 = dma.vmem_to_hbm [thread:$0]  (%p1170_p13), %s671_s28, 128, %s673_s29, %s644_s30  }
 0x635   : > { %s654_s24 = scalar_lea.hbm %s1298_s4, %s817_s22  ;;  %s275_s26 = scalar_lea.vmem [#allocation7], %s1208_s23 }
 0x636   : > { %s656_s9 = sshll.u32 %s275_s26, 4  ;;  %s658_s11 = sshll.u32 %s654_s24, 4  ;;  %s657_s9 = int_to_ptr.vmem [resolvable:$true] %s656_s9  ;;  %s659_s11 = int_to_ptr.hbm [resolvable:$true] %s658_s11 }
 0x637   : > { %s639_s6 = scalar_lea.sflag [#allocation4], %s1205_s13  ;;  %s1013_s8 = sshra.s32 %s659_s11, 4  ;;  %s1014_s8 = int_to_ptr.hbm [resolvable:$true] %s1013_s8 }
 0x638   : > { %s1015_s25 = scalar_lea.hbm %s1014_s8, 8  ;;  %s1019_s22 = scalar_lea.hbm %s1298_s4, 16 }
 0x639   : > { %p1016_p11 = scmp.ne.s32.totalorder %s1014_s8, %s1015_s25  ;;  %p1020_p6 = scmp.lt.s32.totalorder %s1014_s8, %s1298_s4 }
 0x63a   : > { %p1021_p3 = scmp.lt.s32.totalorder %s1019_s22, %s1015_s25 }
 0x63b   : > { %p1017_p0 = pnand %p1016_p11, %p1170_p13 }
 0x63c   : > { %p1022_p1 = por %p1021_p3, %p1020_p6 }
 0x63d   : > { %p1018_p2 = pneg %p1017_p0 }
 0x63f   : > { %p1023_p5 = pnand %p1022_p1, %p1018_p2 }
 0x6b5   : > { %v634_v59 = vpop.f32.mrf.mxu2 }
 0x6b6   : > { %637 = vst.msk [vmem:[%s275_s26] sm:$0xff] %vm290_vm0, %v634_v59 }
 0x6b7   : > { %1026 = shalt.err (!%p1023_p5)
}
 0x6b8   : > { %827 = dma.vmem_to_hbm [thread:$0]  (%p1170_p13), %s657_s9, 128, %s659_s11, %s639_s6  }
 0x6b9 PF: > { %s684_s13 = sand.u32 1, %s1061_s18   ;;  %p1305_p12 = scmp.ge.s32.totalorder %s1073_s21, 2 }
 0x6ba   : > { %s685_s16 = scalar_lea.sflag [#allocation4], %s684_s13 }
 0x6bb   : > { %p840_p8 = pnand %p1305_p12, %p1175_p4 }
 0x6bd   : > { %p841_p7 = pneg %p840_p8 }
 0x6bf   : > { %1052 = dma.done.wait (%p841_p7), %s685_s16, 128  }
 0x6c0   : > { %1054 = vsyncadd (%p841_p7), %s685_s16, 4294967168  ;;  %s695_s15 = scalar_lea.sflag [#allocation9], %s684_s13 }
 0x6c1   : > { %1056 = dma.done.wait (%p841_p7), %s695_s15, 128  }
 0x6c2   : > { %1058 = vsyncadd (%p841_p7), %s695_s15, 4294967168  ;;  %p23_p13 = scmp.ge.s32.totalorder %s1150_s7, 4   ;;  %s1306_s18 = smov %s1065_s19 }
 0x6c3   : > { %s1307_s19 = smov %s1069_s20  ;;  %s1308_s20 = smov %s1162_s10 }
 0x6c4   : > { %s1309_s21 = smov %s1150_s7  ;;  %25 = sbr.rel (!%p23_p13) target bundleno = 8 (0x8), region = 106 }
 0x6c9   :  { %701 = vsyncpa [#allocation3], 1 }
 0x6ca   :  { %703 = vsyncpa [#allocation3 + $0x1], 1 }
 0x6cb   :  { %704 = vsyncpa [#allocation6], 1 }
 0x6cc   :  { %706 = vsyncpa [#allocation6 + $0x1], 1 }
 0x6cd   :  { %707 = vsyncpa [#allocation4], 1 }
 0x6ce   :  { %709 = vsyncpa [#allocation4 + $0x1], 1 }
 0x6cf   :  { %710 = vsyncpa [#allocation9], 1 }
 0x6d0   :  { %712 = vsyncpa [#allocation9 + $0x1], 1 }

</bundles_post_ra>
